<compile_context>
chip_gen: v5e
topology: v5e:2x2
jax: 0.10.0
libtpu: 0.0.40
codegen_flags: <defaults>
</compile_context>

<pallas_src>
import functools

import jax
import jax.numpy as jnp
from jax.experimental import pallas as pl
from jax.experimental.pallas import tpu as pltpu


def rope_kernel(x_ref, cos_ref, s_even_ref, s_odd_ref, o_ref):
    # x_ref / o_ref: (b_block, tile_t, D). Tables: (tile_t, D), broadcast over b.
    x = x_ref[...]
    d = x.shape[-1]

    # Adjacent-pair rotate_half without iota/select: parity sign + mask live in
    # the sin tables; table zeros also neutralize the roll wrap-around lanes.
    x_next = pltpu.roll(x, d - 1, 2)   # x[(j+1) % d] lands at lane j   (XLU)
    x_prev = pltpu.roll(x, 1, 2)       # x[(j-1) % d] lands at lane j   (XLU)

    o_ref[...] = (x * cos_ref[...]
                  + x_next * s_even_ref[...]
                  + x_prev * s_odd_ref[...]).astype(o_ref.dtype)


def _rope_tables(seq_len, dim, base, dtype):
    """cos / signed-masked-sin tables, shape (seq_len, dim).

    s_even[j] = -sin[j] on even lanes, 0 on odd  (multiplies x[(j+1)])
    s_odd [j] = +sin[j] on odd lanes,  0 on even (multiplies x[(j-1)])
    """
    exponent = jnp.arange(0, dim, 2, dtype=jnp.float32) / dim            # (D/2,)
    theta = jnp.power(jnp.float32(base), -exponent)                      # (D/2,)
    angles = jnp.arange(seq_len, dtype=jnp.float32)[:, None] * theta     # (T, D/2)
    angles = jnp.repeat(angles, 2, axis=-1)                              # (T, D)
    cos = jnp.cos(angles)
    sin = jnp.sin(angles)
    parity = jnp.arange(dim, dtype=jnp.int32) % 2                        # (D,)
    s_even = jnp.where(parity == 0, -sin, 0.0)
    s_odd = jnp.where(parity == 1, sin, 0.0)
    return cos.astype(dtype), s_even.astype(dtype), s_odd.astype(dtype)


@functools.partial(jax.jit, static_argnames=("base", "block_t", "target_block_bytes"))
def rope_pallas(x, *, base=10_000, block_t=256, target_block_bytes=2 << 20):
    """x: (B, T, D) -> (B, T, D) with RoPE applied along the last dim."""
    B, T, D = x.shape
    assert D % 2 == 0, "embedding dimension must be even"

    # bf16 inputs: native bf16 math + bf16 tables (v6e/v7x bf16 VALU, half the
    # table traffic). Everything else computes in f32.
    table_dtype = jnp.bfloat16 if x.dtype == jnp.bfloat16 else jnp.float32
    itemsize = x.dtype.itemsize
    tab_itemsize = jnp.dtype(table_dtype).itemsize

    # Seq tile: a multiple of 8 sublanes, capped at block_t. The partial last
    # tile (if T % tile_t != 0) is masked by Pallas — no pad / slice of x.
    block_t = max(8, (block_t // 8) * 8)
    tile_t = min(block_t, pl.cdiv(T, 8) * 8)
    num_t = pl.cdiv(T, tile_t)

    # Fold a batch sub-block so each step moves ~target_block_bytes of x.
    row_bytes = tile_t * D * itemsize
    b_block = int(max(1, min(B, target_block_bytes // max(row_bytes, 1))))
    while B % b_block:                      # keep batch blocks exact
        b_block -= 1
    # v7x has 2 TensorCores: keep at least 2 grid steps on a parallel axis.
    if num_t * (B // b_block) < 2 and b_block > 1:
        b_block = next(d for d in range(b_block // 2, 0, -1) if B % d == 0)
    num_b = B // b_block

    cos_tab, s_even, s_odd = _rope_tables(T, D, base, table_dtype)

    # VMEM budget: in + out + 3 tables, double-buffered; cap so it fits v7x.
    x_block_bytes = b_block * tile_t * D * itemsize
    tab_block_bytes = tile_t * D * tab_itemsize
    vmem_needed = 2 * (2 * x_block_bytes + 3 * tab_block_bytes)
    vmem_limit = int(min(48 << 20, max(16 << 20, vmem_needed * 3 // 2)))

    cost = pl.CostEstimate(
        flops=5 * B * T * D,                                   # 3 mul + 2 add / elem
        transcendentals=0,
        bytes_accessed=2 * B * T * D * itemsize + 3 * T * D * tab_itemsize,
    )

    return pl.pallas_call(
        rope_kernel,
        out_shape=jax.ShapeDtypeStruct((B, T, D), x.dtype),
        grid_spec=pltpu.PrefetchScalarGridSpec(
            num_scalar_prefetch=0,
            grid=(num_t, num_b),            # b innermost -> table re-DMA skipped
            in_specs=[
                pl.BlockSpec((b_block, tile_t, D), lambda t, b: (b, t, 0)),  # x
                pl.BlockSpec((tile_t, D), lambda t, b: (t, 0)),              # cos
                pl.BlockSpec((tile_t, D), lambda t, b: (t, 0)),              # s_even
                pl.BlockSpec((tile_t, D), lambda t, b: (t, 0)),              # s_odd
            ],
            out_specs=pl.BlockSpec((b_block, tile_t, D), lambda t, b: (b, t, 0)),
        ),
        compiler_params=pltpu.CompilerParams(
            dimension_semantics=("parallel", "parallel"),
            vmem_limit_bytes=vmem_limit,
        ),
        cost_estimate=cost,
    )(x, cos_tab, s_even, s_odd)


def rope_reference(x, base):
    """Independent pure-JAX port of the PyTorch RoPE.forward."""
    B, T, D = x.shape
    exponent = jnp.arange(0, D, 2, dtype=jnp.float32) / D
    theta = jnp.power(jnp.float32(base), -exponent)
    angles = jnp.arange(T, dtype=jnp.float32)[:, None] * theta
    angles = jnp.repeat(angles, 2, axis=-1)
    x_pairs = x.astype(jnp.float32).reshape(B, T, D // 2, 2)
    x1, x2 = x_pairs[..., 0], x_pairs[..., 1]
    rot = jnp.stack((-x2, x1), axis=-1).reshape(B, T, D)
    out = x.astype(jnp.float32) * jnp.cos(angles) + rot * jnp.sin(angles)
    return out.astype(x.dtype)


if __name__ == "__main__":
    base = 10_000
    key = jax.random.PRNGKey(0)
    k0, k1 = jax.random.split(key)

    # Primary small shape consistent with the module: (batch=2, seq=8, embed=128).
    x = jax.random.normal(k0, (2, 8, 128), dtype=jnp.float32)
    out = jax.block_until_ready(rope_pallas(x, base=base))
    assert out.shape == x.shape
    assert jnp.allclose(out, rope_reference(x, base), atol=1e-4, rtol=1e-4), \
        "mismatch vs reference (aligned T)"

    # Non-tile-aligned seq length: exercises the pad-free path where the partial
    # last seq tile is masked by Pallas instead of a wrapper pad + slice.
    x2 = jax.random.normal(k1, (2, 40, 128), dtype=jnp.float32)
    out2 = jax.block_until_ready(rope_pallas(x2, base=base, block_t=16))
    assert out2.shape == x2.shape
    assert jnp.allclose(out2, rope_reference(x2, base), atol=1e-4, rtol=1e-4), \
        "mismatch vs reference (partial tile)"

    print("KERNEL_OK")
</pallas_src>

<mosaic_0001>
module attributes {stable_mosaic.version = 11 : i64} {
  func.func @rope_kernel(%arg0: i32, %arg1: i32, %arg2: memref<1x8x128xf32, #tpu.memory_space<vmem>>, %arg3: memref<8x128xf32, #tpu.memory_space<vmem>>, %arg4: memref<8x128xf32, #tpu.memory_space<vmem>>, %arg5: memref<8x128xf32, #tpu.memory_space<vmem>>, %arg6: memref<1x8x128xf32, #tpu.memory_space<vmem>>) attributes {dimension_semantics = [#tpu.dimension_semantics<parallel>, #tpu.dimension_semantics<parallel>], iteration_bounds = array<i64: 1, 2>, scalar_prefetch = 0 : i64, scratch_operands = 0 : i64, tpu.core_type = #tpu.core_type<tc>, window_params = [{transform_indices = @transform_0, window_bounds = array<i64: 1, 8, 128>}, {transform_indices = @transform_1, window_bounds = array<i64: 8, 128>}, {transform_indices = @transform_2, window_bounds = array<i64: 8, 128>}, {transform_indices = @transform_3, window_bounds = array<i64: 8, 128>}, {transform_indices = @transform_4, window_bounds = array<i64: 1, 8, 128>}]} {
    %c0 = arith.constant 0 : index
    %c0_0 = arith.constant 0 : index
    %c0_1 = arith.constant 0 : index
    %0 = vector.load %arg2[%c0, %c0_0, %c0_1] : memref<1x8x128xf32, #tpu.memory_space<vmem>>, vector<1x8x128xf32>
    %c127_i32 = arith.constant 127 : i32
    %1 = tpu.dynamic_rotate %0 by %c127_i32 dim 2 : vector<1x8x128xf32>, i32 -> vector<1x8x128xf32>
    %c1_i32 = arith.constant 1 : i32
    %2 = tpu.dynamic_rotate %0 by %c1_i32 dim 2 : vector<1x8x128xf32>, i32 -> vector<1x8x128xf32>
    %c0_2 = arith.constant 0 : index
    %c0_3 = arith.constant 0 : index
    %3 = vector.load %arg3[%c0_2, %c0_3] : memref<8x128xf32, #tpu.memory_space<vmem>>, vector<8x128xf32>
    %4 = vector.shape_cast %3 : vector<8x128xf32> to vector<1x8x128xf32>
    %5 = arith.mulf %0, %4 : vector<1x8x128xf32>
    %c0_4 = arith.constant 0 : index
    %c0_5 = arith.constant 0 : index
    %6 = vector.load %arg4[%c0_4, %c0_5] : memref<8x128xf32, #tpu.memory_space<vmem>>, vector<8x128xf32>
    %7 = vector.shape_cast %6 : vector<8x128xf32> to vector<1x8x128xf32>
    %8 = arith.mulf %1, %7 : vector<1x8x128xf32>
    %9 = arith.addf %5, %8 : vector<1x8x128xf32>
    %c0_6 = arith.constant 0 : index
    %c0_7 = arith.constant 0 : index
    %10 = vector.load %arg5[%c0_6, %c0_7] : memref<8x128xf32, #tpu.memory_space<vmem>>, vector<8x128xf32>
    %11 = vector.shape_cast %10 : vector<8x128xf32> to vector<1x8x128xf32>
    %12 = arith.mulf %2, %11 : vector<1x8x128xf32>
    %13 = arith.addf %9, %12 : vector<1x8x128xf32>
    %c0_8 = arith.constant 0 : index
    %c0_9 = arith.constant 0 : index
    %c0_10 = arith.constant 0 : index
    %14 = vector.load %arg6[%c0_8, %c0_9, %c0_10] : memref<1x8x128xf32, #tpu.memory_space<vmem>>, vector<1x8x128xf32>
    tpu.vector_store %arg6[%c0_8, %c0_9, %c0_10], %13 {strides = array<i32>} : memref<1x8x128xf32, #tpu.memory_space<vmem>>, vector<1x8x128xf32>,
    return
  }
  func.func @transform_0(%arg0: i32, %arg1: i32) -> (i32, i32, i32) {
    %c0_i32 = arith.constant 0 : i32
    %c0_i32_0 = arith.constant 0 : i32
    return %arg1, %arg0, %c0_i32 : i32, i32, i32
  }
  func.func @transform_1(%arg0: i32, %arg1: i32) -> (i32, i32) {
    %c0_i32 = arith.constant 0 : i32
    %c0_i32_0 = arith.constant 0 : i32
    return %arg0, %c0_i32 : i32, i32
  }
  func.func @transform_2(%arg0: i32, %arg1: i32) -> (i32, i32) {
    %c0_i32 = arith.constant 0 : i32
    %c0_i32_0 = arith.constant 0 : i32
    return %arg0, %c0_i32 : i32, i32
  }
  func.func @transform_3(%arg0: i32, %arg1: i32) -> (i32, i32) {
    %c0_i32 = arith.constant 0 : i32
    %c0_i32_0 = arith.constant 0 : i32
    return %arg0, %c0_i32 : i32, i32
  }
  func.func @transform_4(%arg0: i32, %arg1: i32) -> (i32, i32, i32) {
    %c0_i32 = arith.constant 0 : i32
    %c0_i32_0 = arith.constant 0 : i32
    return %arg1, %arg0, %c0_i32 : i32, i32, i32
  }
}

</mosaic_0001>

<bundles_post_ra>
// kernel: rope_pallas.1
= control target key start
LH: loop header
LB: loop body
LE: loop exit
PB: predicated region body
PF: predicated region fallthrough
CT: control target
= control target key end

     0   :  { %9 = vsyncpa [#allocation3], 0  ;;  %s700_s0 = inlined_call_operand.vmem [shape: f32[2,8,128], index: 0, kind: input, shape index: {}]   ;;  %s701_s1 = inlined_call_operand.vmem [shape: f32[8,128], index: 1, kind: input, shape index: {}]   ;;  %s702_s2 = inlined_call_operand.vmem [shape: f32[8,128], index: 2, kind: input, shape index: {}]   ;;  %s703_s3 = inlined_call_operand.vmem [shape: f32[8,128], index: 3, kind: input, shape index: {}]   ;;  %s704_s4 = inlined_call_operand.hbm [shape: f32[2,8,128], index: 4, kind: output, shape index: {}]  }
   0x1   :  { %11 = vsyncpa [#allocation3 + $0x1], 0  ;;  %s594_s15 = smov 0   ;;  %s596_s16 = smov 0  }
   0x2   :  { %s598_s17 = smov 0   ;;  %s600_s18 = smov 0  }
   0x3   :  { %s602_s19 = smov 0   ;;  %s604_s20 = smov 0  }
   0x4 LB: > { %s416_s21 = sadd.s32 4294967295, %s565_s20   ;;  %s417_s22 = sadd.s32 4294967294, %s565_s20   ;;  %s565_s20 = sphi %s604_s20, %s17_s20   ;;  %s561_s19 = sphi %s602_s19, %s711_s19   ;;  %s557_s18 = sphi %s600_s18, %s710_s18   ;;  %s553_s17 = sphi %s598_s17, %s709_s17   ;;  %s549_s16 = sphi %s596_s16, %s708_s16   ;;  %s545_s15 = sphi %s594_s15, %s707_s15  }
   0x5   : > { %s26_s23 = sadd.s32 1, %s561_s19  ;;  %s144_s24 = sadd.s32 1, %s553_s17 }
   0x6   : > { %p27_p0 = scmp.ge.s32.totalorder %s26_s23, 2  ;;  %p154_p1 = scmp.ne.s32.totalorder %s553_s17, %s549_s16 }
   0x7   : > { %p155_p2 = scmp.eq.s32.totalorder %s416_s21, 1  ;;  %p160_p3 = scmp.ne.s32.totalorder %s549_s16, %s545_s15 }
   0x8   : > { %s713_s23 = smov (%p27_p0, %s26_s23), 0  ;;  %p161_p5 = scmp.eq.s32.totalorder %s417_s22, 1 }
   0x9   : > { %p634_p4 = por %p155_p2, %p154_p1  ;;  %s139_s26 = ssub.s32 %s561_s19, %s713_s23 }
   0xa   : > { %p423_p6 = scmp.ge.s32.totalorder %s565_s20, 1  ;;  %p142_p7 = scmp.eq.s32.totalorder %s139_s26, 0 }
   0xb   : > { %p641_p8 = por %p161_p5, %p160_p3  ;;  %p210_p9 = scmp.lt.s32.totalorder %s565_s20, 3 }
   0xc   : > { %s647_s28 = scalar_select %p142_p7, %s553_s17, %s144_s24  }
   0xd   : > { %p211_p10 = pnand %p423_p6, %p210_p9 }
   0xe   : > { %p250_p11 = scmp.lt.s32.totalorder (!%p211_p10), %s557_s18, 1  ;;  %s567_s8 = smov (!%p211_p10), 127  }
   0xf   : > { %214 = sbr.rel (%p211_p10) target bundleno = 155 (0x9b), region = 36  ;;  %s568_s9 = smov (!%p211_p10), 1  }
  0x10   : > { %s247_s10 = sand.u32 (!%p211_p10), 1, %s549_s16   ;;  %s427_s22 = sshll.u32 (!%p211_p10), %s557_s18, 3 }
  0x11   : > { %s424_s21 = sshll.u32 (!%p211_p10), %s247_s10, 3  ;;  %s507_s14 = scalar_lea.hbm (!%p211_p10), %s704_s4, 16 }
  0x12   : > { %s249_s6 = scalar_lea.vmem (!%p211_p10), [#allocation2], %s424_s21 }
  0x14   : > { %s251_s29 = scalar_select %p250_p11, %s557_s18, 1  ;;  %v274_v2 = vld [vmem:[%s701_s1] sm:$0xff] }
  0x15   : > { %v276_v3 = vld [vmem:[%s702_s2] sm:$0xff]  ;;  %s284_s18 = scalar_lea.sflag [#allocation3], %s247_s10 }
  0x16   : > { %s425_s30 = sshll.u32 %s251_s29, 3  ;;  %s295_s29 = scalar_lea.hbm %s704_s4, %s427_s22  ;;  %v279_v6 = vld [vmem:[%s703_s3] sm:$0xff] }
  0x17   : > { %s256_s7 = scalar_lea.vmem %s700_s0, %s425_s30 }
  0x18   : > { %v269_v0 = vld [vmem:[%s256_s7] sm:$0xff]  ;;  %s297_s7 = sshll.u32 %s249_s6, 4  ;;  %s298_s7 = int_to_ptr.vmem [resolvable:$true] %s297_s7 }
  0x19   : > { %270 = vrot.lane.b32.xlu0 %v269_v0, %s567_s8  ;;  %v275_v4 = vmul.f32 %v274_v2, %v269_v0  ;;  %s299_s8 = sshll.u32 %s295_s29, 4  ;;  %s300_s8 = int_to_ptr.hbm [resolvable:$true] %s299_s8 }
  0x21   : > { %272 = vrot.lane.b32.xlu0 %v269_v0, %s568_s9  ;;  %s501_s9 = sshra.s32 %s300_s8, 4  ;;  %s502_s9 = int_to_ptr.hbm [resolvable:$true] %s501_s9 }
  0x22   : > { %s503_s11 = scalar_lea.hbm %s502_s9, 8  ;;  %p508_p1 = scmp.lt.s32.totalorder %s502_s9, %s704_s4 }
  0x23   : > { %p504_p12 = scmp.ne.s32.totalorder %s502_s9, %s503_s11  ;;  %p509_p2 = scmp.lt.s32.totalorder %s507_s14, %s503_s11 }
  0x25   : > { %p505_p13 = pnand %p504_p12, %p634_p4  ;;  %p510_p3 = por %p509_p2, %p508_p1 }
  0x27   : > { %p506_p0 = pneg %p505_p13 }
  0x29   : > { %p511_p5 = pnand %p510_p3, %p506_p0 }
  0x8b   : > { %v271_v1 = vpop.permute.xlu0 %270 }
  0x8c   : > { %v277_v5 = vmul.f32 %v276_v3, %v271_v1 }
  0x8e   : > { %v278_v8 = vadd.f32 %v277_v5, %v275_v4 }
  0x93   : > { %v273_v7 = vpop.permute.xlu0 %272 }
  0x94   : > { %v280_v9 = vmul.f32 %v279_v6, %v273_v7 }
  0x96   : > { %v281_v10 = vadd.f32 %v280_v9, %v278_v8 }
  0x98   : > { %282 = vst [vmem:[%s249_s6] sm:$0xff] %v281_v10 }
  0x99   : > { %514 = shalt.err (!%p511_p5)
}
  0x9a   : > { %430 = dma.vmem_to_hbm [thread:$0]  (%p634_p4), %s298_s7, 128, %s300_s8, %s284_s18  }
  0x9b PF: > { %p436_p6 = scmp.ge.s32.totalorder %s565_s20, 2  ;;  %s311_s10 = sand.u32 1, %s545_s15  }
  0x9c   : > { %s312_s24 = scalar_lea.sflag [#allocation3], %s311_s10 }
  0x9d   : > { %p433_p7 = pnand %p436_p6, %p641_p8 }
  0x9f   : > { %p434_p9 = pneg %p433_p7 }
  0xa1   : > { %540 = dma.done.wait (%p434_p9), %s312_s24, 128  }
  0xa2   : > { %542 = vsyncadd (%p434_p9), %s312_s24, 4294967168  ;;  %s17_s20 = sadd.s32 1, %s565_s20   ;;  %s707_s15 = smov %s549_s16 }
  0xa3   : > { %p14_p10 = scmp.ge.s32.totalorder %s17_s20, 4   ;;  %s708_s16 = smov %s553_s17 }
  0xa4   : > { %s709_s17 = smov %s647_s28  ;;  %s710_s18 = smov %s561_s19 }
  0xa5   : > { %s711_s19 = smov %s713_s23  ;;  %16 = sbr.rel (!%p14_p10) target bundleno = 4 (0x4), region = 80 }
  0xaa   :  { %318 = vsyncpa [#allocation3], 1 }
  0xab   :  { %320 = vsyncpa [#allocation3 + $0x1], 1 }

</bundles_post_ra>
